<compile_context>
chip_gen: v7x
topology: tpu7x:2x2x1
jax: 0.10.0
libtpu: 0.0.40
codegen_flags: <defaults>
</compile_context>

<pallas_src>
import functools
import math

import jax
import jax.numpy as jnp
from jax.experimental import pallas as pl
from jax.experimental.pallas import tpu as pltpu


# Field spec mirroring the torch module's `fields` argument:
# ("categorical", dim) -> softmax over `dim` columns; ("numerical", 1) -> tanh.
FIELDS = (("categorical", 3), ("numerical", 1), ("categorical", 4), ("numerical", 1))

BN_EPS = 1e-5


# ----------------------------------------------------------------------------
# Kernels
# ----------------------------------------------------------------------------
def _fc_stats_kernel(x_ref, w_ref, z_ref, stats_ref):
    """z = x @ W (bias folded into BN); accumulate per-column sum / sumsq."""
    @pl.when(pl.program_id(0) == 0)
    def _init():
        stats_ref[...] = jnp.zeros_like(stats_ref)

    z = jnp.dot(x_ref[...], w_ref[...], preferred_element_type=jnp.float32)
    z_ref[...] = z
    stats_ref[0:1, :] += jnp.sum(z, axis=0, keepdims=True)
    stats_ref[1:2, :] += jnp.sum(z * z, axis=0, keepdims=True)


def _bn_relu_fc_stats_kernel(z_in_ref, ss_ref, w_ref, z_out_ref, stats_ref,
                             *, block_rows, true_batch, mask_pad):
    """y = relu(z*scale + shift); z_out = y @ W; accumulate sum / sumsq."""
    @pl.when(pl.program_id(0) == 0)
    def _init():
        stats_ref[...] = jnp.zeros_like(stats_ref)

    y = jnp.maximum(z_in_ref[...] * ss_ref[0:1, :] + ss_ref[1:2, :], 0.0)
    if mask_pad:
        # Zero the padded rows so they contribute nothing to the next stats.
        row = (pl.program_id(0) * block_rows
               + jax.lax.broadcasted_iota(jnp.int32, (block_rows, 1), 0))
        y = jnp.where(row < true_batch, y, 0.0)

    z = jnp.dot(y, w_ref[...], preferred_element_type=jnp.float32)
    z_out_ref[...] = z
    stats_ref[0:1, :] += jnp.sum(z, axis=0, keepdims=True)
    stats_ref[1:2, :] += jnp.sum(z * z, axis=0, keepdims=True)


def _bn_relu_fc_act_kernel(z_ref, ss_ref, w_ref, b_ref, out_ref, *, fields):
    """y = relu(z*scale + shift); logits = y @ W3p + b3p; per-field activations
    slice-stored into the lane-dense padded output block."""
    y = jnp.maximum(z_ref[...] * ss_ref[0:1, :] + ss_ref[1:2, :], 0.0)
    logits = (jnp.dot(y, w_ref[...], preferred_element_type=jnp.float32)
              + b_ref[...])

    out_ref[...] = jnp.zeros_like(out_ref)  # zero the padded lanes once
    cur = 0
    for kind, dim in fields:
        seg = logits[:, cur:cur + dim]
        if kind == "categorical":
            m = jnp.max(seg, axis=1, keepdims=True)
            e = jnp.exp(seg - m)
            out_ref[:, cur:cur + dim] = e / jnp.sum(e, axis=1, keepdims=True)
        else:
            out_ref[:, cur:cur + dim] = jnp.tanh(seg)
        cur += dim


# ----------------------------------------------------------------------------
# Wrapper
# ----------------------------------------------------------------------------
def _round_up(x, m):
    return (x + m - 1) // m * m


def _scale_shift(stats, gamma, beta, n):
    """Fold BN into a single FMA: returns (2, H) = [scale; shift]."""
    total, total_sq = stats[0:1, :], stats[1:2, :]
    mu = total / n
    var = jnp.maximum(total_sq / n - mu * mu, 0.0)
    scale = gamma * jax.lax.rsqrt(var + BN_EPS)
    shift = beta - mu * scale
    return jnp.concatenate([scale, shift], axis=0)


def _compiler_params(semantics, *block_shapes):
    # bytes/tile * 2 (double buffering) * 2 (headroom), clamped to a sane range.
    elems = sum(math.prod(s) for s in block_shapes)
    limit = int(min(max(16 * elems, 16 << 20), 64 << 20))
    return pltpu.CompilerParams(dimension_semantics=semantics,
                                vmem_limit_bytes=limit)


def generative_model_forward(x, params, fields=FIELDS, *, block_rows=512):
    """x: (B, input_size) f32 -> (B, output_size) f32.

    block_rows: batch-tile size (512 is a safe default for v5e/v6e; use
    256-512 on v7x where per-core VMEM is 64 MiB).
    """
    B, in_dim = x.shape
    w1, w2, w3 = params["w1"], params["w2"], params["w3"]
    h1_dim, h2_dim, out_dim = w1.shape[1], w2.shape[1], w3.shape[1]
    out_pad = _round_up(out_dim, 128)

    # Batch tiling (tiny batches collapse to a single tile).
    tb = min(block_rows, _round_up(B, 8))
    b_pad = _round_up(B, tb)
    n_tiles = b_pad // tb
    mask_pad = b_pad != B

    xp = x if not mask_pad else jnp.pad(x, ((0, b_pad - B), (0, 0)))
    w3p = jnp.pad(w3, ((0, 0), (0, out_pad - out_dim)))
    b3p = jnp.pad(params["b3"], ((0, 0), (0, out_pad - out_dim)))

    f32 = jnp.float32

    def row_spec(cols):
        return pl.BlockSpec((tb, cols), lambda i: (i, 0))

    def rep_spec(rows, cols):
        return pl.BlockSpec((rows, cols), lambda i: (0, 0))

    # ---- pass 1: fc1 (+ BN1 statistics) -------------------------------------
    z1, stats1 = pl.pallas_call(
        _fc_stats_kernel,
        out_shape=(jax.ShapeDtypeStruct((b_pad, h1_dim), f32),
                   jax.ShapeDtypeStruct((2, h1_dim), f32)),
        grid_spec=pltpu.PrefetchScalarGridSpec(
            num_scalar_prefetch=0, grid=(n_tiles,),
            in_specs=[row_spec(in_dim), rep_spec(in_dim, h1_dim)],
            out_specs=(row_spec(h1_dim), rep_spec(2, h1_dim))),
        compiler_params=_compiler_params(
            ("arbitrary",),
            (tb, in_dim), (in_dim, h1_dim), (tb, h1_dim), (2, h1_dim)),
        cost_estimate=pl.CostEstimate(
            flops=2 * b_pad * in_dim * h1_dim + 4 * b_pad * h1_dim,
            transcendentals=0,
            bytes_accessed=4 * (b_pad * in_dim + in_dim * h1_dim
                                + b_pad * h1_dim + 2 * h1_dim)),
    )(xp, w1)
    ss1 = _scale_shift(stats1, params["g1"], params["be1"], B)

    # ---- pass 2: BN1-apply + ReLU + fc2 (+ BN2 statistics) ------------------
    k2 = functools.partial(_bn_relu_fc_stats_kernel, block_rows=tb,
                           true_batch=B, mask_pad=mask_pad)
    z2, stats2 = pl.pallas_call(
        k2,
        out_shape=(jax.ShapeDtypeStruct((b_pad, h2_dim), f32),
                   jax.ShapeDtypeStruct((2, h2_dim), f32)),
        grid_spec=pltpu.PrefetchScalarGridSpec(
            num_scalar_prefetch=0, grid=(n_tiles,),
            in_specs=[row_spec(h1_dim), rep_spec(2, h1_dim),
                      rep_spec(h1_dim, h2_dim)],
            out_specs=(row_spec(h2_dim), rep_spec(2, h2_dim))),
        compiler_params=_compiler_params(
            ("arbitrary",),
            (tb, h1_dim), (2, h1_dim), (h1_dim, h2_dim),
            (tb, h2_dim), (2, h2_dim)),
        cost_estimate=pl.CostEstimate(
            flops=(2 * b_pad * h1_dim * h2_dim + 4 * b_pad * h1_dim
                   + 4 * b_pad * h2_dim),
            transcendentals=0,
            bytes_accessed=4 * (b_pad * h1_dim + h1_dim * h2_dim
                                + b_pad * h2_dim + 2 * (h1_dim + h2_dim))),
    )(z1, ss1, w2)
    ss2 = _scale_shift(stats2, params["g2"], params["be2"], B)

    # ---- pass 3: BN2-apply + ReLU + fc3 + per-field activations -------------
    k3 = functools.partial(_bn_relu_fc_act_kernel, fields=tuple(fields))
    out_padded = pl.pallas_call(
        k3,
        out_shape=jax.ShapeDtypeStruct((b_pad, out_pad), f32),
        grid_spec=pltpu.PrefetchScalarGridSpec(
            num_scalar_prefetch=0, grid=(n_tiles,),
            in_specs=[row_spec(h2_dim), rep_spec(2, h2_dim),
                      rep_spec(h2_dim, out_pad), rep_spec(1, out_pad)],
            out_specs=row_spec(out_pad)),
        compiler_params=_compiler_params(
            ("parallel",),
            (tb, h2_dim), (2, h2_dim), (h2_dim, out_pad),
            (1, out_pad), (tb, out_pad)),
        cost_estimate=pl.CostEstimate(
            flops=2 * b_pad * h2_dim * out_pad + 8 * b_pad * out_pad,
            transcendentals=2 * b_pad * out_dim,
            bytes_accessed=4 * (b_pad * h2_dim + h2_dim * out_pad
                                + b_pad * out_pad)),
    )(z2, ss2, w3p, b3p)

    return out_padded[:B, :out_dim]


# ----------------------------------------------------------------------------
# Parameter init (PyTorch-Linear-like uniform fan-in) & pure-JAX reference
# ----------------------------------------------------------------------------
def init_params(key, input_size, hidden1, hidden2, output_size):
    ks = jax.random.split(key, 6)

    def lin(kw, kb, fan_in, fan_out):
        bound = 1.0 / jnp.sqrt(fan_in)
        w = jax.random.uniform(kw, (fan_in, fan_out), jnp.float32, -bound, bound)
        b = jax.random.uniform(kb, (1, fan_out), jnp.float32, -bound, bound)
        return w, b

    w1, b1 = lin(ks[0], ks[1], input_size, hidden1)
    w2, b2 = lin(ks[2], ks[3], hidden1, hidden2)
    w3, b3 = lin(ks[4], ks[5], hidden2, output_size)
    return {
        "w1": w1, "b1": b1,
        "g1": jnp.ones((1, hidden1), jnp.float32),
        "be1": jnp.zeros((1, hidden1), jnp.float32),
        "w2": w2, "b2": b2,
        "g2": jnp.ones((1, hidden2), jnp.float32),
        "be2": jnp.zeros((1, hidden2), jnp.float32),
        "w3": w3, "b3": b3,
    }


def _reference(x, p, fields=FIELDS):
    """Pure-JAX reference (torch training-mode BN with biased variance)."""
    def bn(h, g, be):
        mu = jnp.mean(h, axis=0, keepdims=True)
        var = jnp.mean((h - mu) ** 2, axis=0, keepdims=True)
        return (h - mu) / jnp.sqrt(var + BN_EPS) * g + be

    h = jax.nn.relu(bn(x @ p["w1"] + p["b1"], p["g1"], p["be1"]))
    h = jax.nn.relu(bn(h @ p["w2"] + p["b2"], p["g2"], p["be2"]))
    out = h @ p["w3"] + p["b3"]
    pieces, cur = [], 0
    for kind, dim in fields:
        if kind == "categorical":
            pieces.append(jax.nn.softmax(out[:, cur:cur + dim], axis=1))
            cur += dim
        else:
            pieces.append(jnp.tanh(out[:, cur:cur + 1]))
            cur += 1
    return jnp.concatenate(pieces, axis=1)


if __name__ == "__main__":
    key = jax.random.PRNGKey(0)
    kx, kp = jax.random.split(key)

    batch = 8
    input_size = 16
    hidden_size_1 = 32
    hidden_size_2 = 32
    output_size = sum(d for _, d in FIELDS)  # 3 + 1 + 4 + 1 = 9

    params = init_params(kp, input_size, hidden_size_1, hidden_size_2, output_size)
    x = jax.random.normal(kx, (batch, input_size), jnp.float32)

    out = generative_model_forward(x, params)
    out = jax.block_until_ready(out)

    ref = _reference(x, params)
    assert out.shape == (batch, output_size)
    assert jnp.allclose(out, ref, atol=5e-5, rtol=5e-5), (
        "mismatch vs reference, max abs err = "
        + str(float(jnp.max(jnp.abs(out - ref)))))

    print("KERNEL_OK")
</pallas_src>

<mosaic_0001>
module attributes {stable_mosaic.version = 11 : i64} {
  func.func @_fc_stats_kernel(%arg0: i32, %arg1: memref<8x16xf32, #tpu.memory_space<vmem>>, %arg2: memref<16x32xf32, #tpu.memory_space<vmem>>, %arg3: memref<8x32xf32, #tpu.memory_space<vmem>>, %arg4: memref<2x32xf32, #tpu.memory_space<vmem>>) attributes {dimension_semantics = [#tpu.dimension_semantics<arbitrary>], iteration_bounds = array<i64: 1>, scalar_prefetch = 0 : i64, scratch_operands = 0 : i64, tpu.core_type = #tpu.core_type<tc>, window_params = [{transform_indices = @transform_0, window_bounds = array<i64: 8, 16>}, {pipeline_mode = #tpu.pipeline_mode<synchronous>, transform_indices = @transform_1, window_bounds = array<i64: 16, 32>}, {transform_indices = @transform_2, window_bounds = array<i64: 8, 32>}, {pipeline_mode = #tpu.pipeline_mode<synchronous>, transform_indices = @transform_3, window_bounds = array<i64: 2, 32>}]} {
    %c0_i32 = arith.constant 0 : i32
    %0 = arith.cmpi eq, %arg0, %c0_i32 : i32
    %1 = arith.extui %0 : i1 to i32
    %c0_i32_0 = arith.constant 0 : i32
    %2 = arith.cmpi ne, %1, %c0_i32_0 : i32
    scf.if %2 {
      %cst_15 = arith.constant 0.000000e+00 : f32
      %18 = vector.broadcast %cst_15 : f32 to vector<2x32xf32>
      %c0_16 = arith.constant 0 : index
      %c0_17 = arith.constant 0 : index
      %19 = vector.load %arg4[%c0_16, %c0_17] : memref<2x32xf32, #tpu.memory_space<vmem>>, vector<2x32xf32>
      tpu.vector_store %arg4[%c0_16, %c0_17], %18 {strides = array<i32>} : memref<2x32xf32, #tpu.memory_space<vmem>>, vector<2x32xf32>,
    } else {
    }
    %c0 = arith.constant 0 : index
    %c0_1 = arith.constant 0 : index
    %3 = vector.load %arg1[%c0, %c0_1] : memref<8x16xf32, #tpu.memory_space<vmem>>, vector<8x16xf32>
    %c0_2 = arith.constant 0 : index
    %c0_3 = arith.constant 0 : index
    %4 = vector.load %arg2[%c0_2, %c0_3] : memref<16x32xf32, #tpu.memory_space<vmem>>, vector<16x32xf32>
    %cst = arith.constant dense<0.000000e+00> : vector<8x32xf32>
    %5 = tpu.matmul %3, %4, %cst {dimension_numbers = #tpu.dot_dimension_numbers<[1], [0], [0], [1], [0, 0, 1, 1], [], []>} : vector<8x16xf32>, vector<16x32xf32>, vector<8x32xf32> -> vector<8x32xf32>
    %c0_4 = arith.constant 0 : index
    %c0_5 = arith.constant 0 : index
    %6 = vector.load %arg3[%c0_4, %c0_5] : memref<8x32xf32, #tpu.memory_space<vmem>>, vector<8x32xf32>
    tpu.vector_store %arg3[%c0_4, %c0_5], %5 {strides = array<i32>} : memref<8x32xf32, #tpu.memory_space<vmem>>, vector<8x32xf32>,
    %c0_6 = arith.constant 0 : index
    %c0_7 = arith.constant 0 : index
    %7 = vector.load %arg4[%c0_6, %c0_7] : memref<2x32xf32, #tpu.memory_space<vmem>>, vector<1x32xf32>
    %cst_8 = arith.constant dense<0.000000e+00> : vector<32xf32>
    %8 = vector.multi_reduction <add>, %5, %cst_8 [0] : vector<8x32xf32> to vector<32xf32>
    %9 = vector.shape_cast %8 : vector<32xf32> to vector<1x32xf32>
    %10 = arith.addf %7, %9 : vector<1x32xf32>
    %c0_9 = arith.constant 0 : index
    %c0_10 = arith.constant 0 : index
    %11 = vector.load %arg4[%c0_9, %c0_10] : memref<2x32xf32, #tpu.memory_space<vmem>>, vector<1x32xf32>
    tpu.vector_store %arg4[%c0_9, %c0_10], %10 {strides = array<i32>} : memref<2x32xf32, #tpu.memory_space<vmem>>, vector<1x32xf32>,
    %c1 = arith.constant 1 : index
    %c0_11 = arith.constant 0 : index
    %12 = vector.load %arg4[%c1, %c0_11] : memref<2x32xf32, #tpu.memory_space<vmem>>, vector<1x32xf32>
    %13 = arith.mulf %5, %5 : vector<8x32xf32>
    %cst_12 = arith.constant dense<0.000000e+00> : vector<32xf32>
    %14 = vector.multi_reduction <add>, %13, %cst_12 [0] : vector<8x32xf32> to vector<32xf32>
    %15 = vector.shape_cast %14 : vector<32xf32> to vector<1x32xf32>
    %16 = arith.addf %12, %15 : vector<1x32xf32>
    %c1_13 = arith.constant 1 : index
    %c0_14 = arith.constant 0 : index
    %17 = vector.load %arg4[%c1_13, %c0_14] : memref<2x32xf32, #tpu.memory_space<vmem>>, vector<1x32xf32>
    tpu.vector_store %arg4[%c1_13, %c0_14], %16 {strides = array<i32>} : memref<2x32xf32, #tpu.memory_space<vmem>>, vector<1x32xf32>,
    return
  }
  func.func @transform_0(%arg0: i32) -> (i32, i32) {
    %c0_i32 = arith.constant 0 : i32
    %c0_i32_0 = arith.constant 0 : i32
    return %arg0, %c0_i32 : i32, i32
  }
  func.func @transform_1(%arg0: i32) -> (i32, i32) {
    %c0_i32 = arith.constant 0 : i32
    %c0_i32_0 = arith.constant 0 : i32
    %c0_i32_1 = arith.constant 0 : i32
    return %c0_i32, %c0_i32_0 : i32, i32
  }
  func.func @transform_2(%arg0: i32) -> (i32, i32) {
    %c0_i32 = arith.constant 0 : i32
    %c0_i32_0 = arith.constant 0 : i32
    return %arg0, %c0_i32 : i32, i32
  }
  func.func @transform_3(%arg0: i32) -> (i32, i32) {
    %c0_i32 = arith.constant 0 : i32
    %c0_i32_0 = arith.constant 0 : i32
    %c0_i32_1 = arith.constant 0 : i32
    return %c0_i32, %c0_i32_0 : i32, i32
  }
}

</mosaic_0001>

<bundles_post_ra>
// kernel: tpu_custom_call.1
= control target key start
LH: loop header
LB: loop body
LE: loop exit
PB: predicated region body
PF: predicated region fallthrough
CT: control target
= control target key end

     0   :  { %9 = vsyncpa [#allocation3], 0  ;;  %s384_s0 = inlined_call_operand.hbm [shape: f32[8,16], index: 0, kind: input, shape index: {}]   ;;  %s385_s1 = inlined_call_operand.hbm [shape: f32[16,32], index: 1, kind: input, shape index: {}]   ;;  %s386_s2 = inlined_call_operand.hbm [shape: f32[8,32], index: 2, kind: output, shape index: {0}]   ;;  %s387_s3 = inlined_call_operand.hbm [shape: f32[2,32], index: 3, kind: output, shape index: {1}]  }
   0x1   :  { %10 = vsyncpa [#allocation6], 0 }
   0x2   :  { %11 = vsyncpa [#allocation4], 0 }
   0x3   :  { %12 = vsyncpa [#allocation9], 0  ;;  %s297_s12 = smov [#allocation2]   ;;  %s298_s14 = smov [#allocation5]  }
   0x4   :  { %s19_s13 = sshll.u32 %s297_s12, 4  ;;  %s28_s15 = sshll.u32 %s298_s14, 4  ;;  %s20_s13 = int_to_ptr.vmem [resolvable:$true] %s19_s13  ;;  %s326_s15 = int_to_ptr.vmem [resolvable:$true] %s28_s15 }
   0x5   :  { %s201_s18 = scalar_lea.hbm %s384_s0, 128 }
   0x6   :  { %p202_p0 = scmp.ne.s32.totalorder %s384_s0, %s201_s18  ;;  %p205_p1 = scmp.lt.u32.totalorder %s201_s18, %s384_s0 }
   0x8   :  { %p207_p2 = pnand %p205_p1, %p202_p0 }
   0xa   :  { %210 = shalt.err (!%p207_p2)
}
   0xb   :  { %s211_s23 = scalar_lea.vmem %s20_s13, 128  ;;  %p216_p4 = scmp.lt.s32.totalorder %s20_s13, %s20_s13 }
   0xc   :  { %p212_p3 = scmp.ne.s32.totalorder %s20_s13, %s211_s23  ;;  %p217_p5 = scmp.lt.s32.totalorder %s211_s23, %s211_s23 }
   0xe   :  { %p218_p6 = por %p217_p5, %p216_p4 }
  0x10   :  { %p219_p7 = pnand %p218_p6, %p212_p3 }
  0x12   :  { %222 = shalt.err (!%p219_p7)
}
  0x13   :  { %22 = dma.hbm_to_vmem [thread:$0]  %s384_s0, 128, %s20_s13, [#allocation3]  }
  0x14   :  { %s223_s28 = scalar_lea.hbm %s385_s1, 256 }
  0x15   :  { %p224_p8 = scmp.ne.s32.totalorder %s385_s1, %s223_s28  ;;  %p227_p9 = scmp.lt.u32.totalorder %s223_s28, %s385_s1 }
  0x17   :  { %p229_p10 = pnand %p227_p9, %p224_p8 }
  0x19   :  { %232 = shalt.err (!%p229_p10)
}
  0x1a   :  { %s233_s6 = scalar_lea.vmem %s326_s15, 256  ;;  %p238_p12 = scmp.lt.s32.totalorder %s326_s15, %s326_s15 }
  0x1b   :  { %p234_p11 = scmp.ne.s32.totalorder %s326_s15, %s233_s6  ;;  %p239_p13 = scmp.lt.s32.totalorder %s233_s6, %s233_s6 }
  0x1d   :  { %p240_p0 = por %p239_p13, %p238_p12 }
  0x1f   :  { %p241_p1 = pnand %p240_p0, %p234_p11 }
  0x21   :  { %244 = shalt.err (!%p241_p1)
}
  0x22   :  { %s299_s0 = smov 128   ;;  %s300_s7 = smov 8  }
  0x23   :  { %34 = dma.hbm_to_vmem [thread:$0]  %s385_s1, 256, %s326_s15, [#allocation6], %s299_s0, %s299_s0, %s300_s7  }
  0x24   :  { %289 = dma.done.wait [#allocation3], 128  }
  0x25   :  { %290 = vsyncadd [#allocation3], 4294967168 }
  0x26   :  { %291 = dma.done.wait [#allocation6], 256  }
  0x27   :  { %292 = vsyncadd [#allocation6], 4294967040  ;;  %vm45_vm0 = vcmask 254976   ;;  %v301_v0 = vmov 0.0|0.0   ;;  %v302_v1 = vmov 0.0   ;;  %vm303_vm1 = vmmov 0  }
  0x28   :  { %189 = vmatprep.subr.bf16.mxu0 %v301_v0  ;;  %46 = vst.msk [vmem:[#allocation8] sm:$0x3] %vm45_vm0, %v302_v1  ;;  %186 = vmatprep.mubr.msk.f32.mxu0 %vm303_vm1, %v302_v1  ;;  %v48_v2 = vld [vmem:[#allocation5] sm:$0xff]  ;;  %v49_v3 = vld [vmem:[#allocation5 + $0x8] sm:$0xff]  ;;  %v47_v5 = vld [vmem:[#allocation2] sm:$0xff]  ;;  %vm50_vm2 = vcmask 130048  }
  0x29   :  { %v190_v4 = vpack.c.bf16 %v49_v3, %v48_v2  ;;  %s304_s10 = smov [#allocation7]   ;;  %vm124_vm3 = vcmask 261120  }
  0x2a   :  { %s154_s1 = sshll.u32 %s304_s10, 4  ;;  %s155_s1 = int_to_ptr.vmem [resolvable:$true] %s154_s1 }
  0x2b   :  { %191 = vmatpush3.bf16.msra.mxu0 %v190_v4  ;;  %s245_s11 = scalar_lea.vmem %s155_s1, 128  ;;  %p250_p3 = scmp.lt.s32.totalorder %s155_s1, %s155_s1 }
  0x2c   :  { %p246_p2 = scmp.ne.s32.totalorder %s155_s1, %s245_s11  ;;  %p251_p4 = scmp.lt.s32.totalorder %s245_s11, %s245_s11 }
  0x2e   :  { %187 = vmatmul.mubr.msk.f32.vlgmr.msra.gmra.mrb[0].mxu0 %vm50_vm2, %v47_v5  ;;  %p252_p5 = por %p251_p4, %p250_p3 }
  0x30   :  { %p253_p6 = pnand %p252_p5, %p246_p2 }
 0x101   :  { %v120_v6 = vpop.f32.mrb[0].mxu0 }
 0x102   :  { %v127_v7 = vsel %vm124_vm3, %v120_v6, 0.0  ;;  %v138_v8 = vmul.f32 %v120_v6, %v120_v6  ;;  %125 = vst.msk [vmem:[#allocation7] sm:$0xff] %vm124_vm3, %v120_v6  ;;  %v188_v9 = vpop.f32.mrb[1].mxu0 }
 0x103   :  { %v128_v10 = vrot.slane %v127_v7, 4 }
 0x104   :  { %256 = shalt.err (!%p253_p6)
}
 0x105   :  { %s257_s14 = scalar_lea.hbm %s386_s2, 128 }
 0x106   :  { %p258_p7 = scmp.ne.s32.totalorder %s386_s2, %s257_s14  ;;  %p261_p8 = scmp.lt.u32.totalorder %s257_s14, %s386_s2 }
 0x108   :  { %p263_p9 = pnand %p261_p8, %p258_p7 }
 0x10a   :  { %266 = shalt.err (!%p263_p9)
}
 0x10b   :  { %157 = dma.vmem_to_hbm [thread:$0]  %s155_s1, 128, %s386_s2, [#allocation4]   ;;  %v139_v11 = vsel %vm124_vm3, %v138_v8, 0.0  ;;  %v129_v12 = vadd.f32 %v128_v10, %v127_v7  ;;  %v126_v20 = vld [vmem:[#allocation8] sm:$0x1]  ;;  %vm135_vm4 = vcmask 253952  }
 0x10c   :  { %v140_v13 = vrot.slane %v139_v11, 4  ;;  %v137_v23 = vld [vmem:[#allocation8 + $0x1] sm:$0x1]  ;;  %s305_s21 = smov [#allocation8]  }
 0x10d   :  { %v130_v14 = vrot.slane %v129_v12, 2  ;;  %s164_s22 = sshll.u32 %s305_s21, 4  ;;  %s165_s22 = int_to_ptr.vmem [resolvable:$true] %s164_s22 }
 0x10e   :  { %v141_v15 = vadd.f32 %v140_v13, %v139_v11  ;;  %s267_s2 = scalar_lea.vmem %s165_s22, 32  ;;  %p272_p11 = scmp.lt.s32.totalorder %s165_s22, %s165_s22 }
 0x10f   :  { %v131_v16 = vadd.f32 %v130_v14, %v129_v12  ;;  %p268_p10 = scmp.ne.s32.totalorder %s165_s22, %s267_s2  ;;  %p273_p12 = scmp.lt.s32.totalorder %s267_s2, %s267_s2 }
 0x110   :  { %v142_v17 = vrot.slane %v141_v15, 2 }
 0x111   :  { %v132_v18 = vrot.slane %v131_v16, 1  ;;  %p274_p13 = por %p273_p12, %p272_p11 }
 0x112   :  { %v143_v19 = vadd.f32 %v142_v17, %v141_v15 }
 0x113   :  { %v133_v21 = vadd.f32 %v132_v18, %v131_v16  ;;  %p275_p0 = pnand %p274_p13, %p268_p10 }
 0x114   :  { %v144_v22 = vrot.slane %v143_v19, 1 }
 0x115   :  { %v134_v25 = vadd.f32 %v133_v21, %v126_v20 }
 0x116   :  { %v145_v24 = vadd.f32 %v144_v22, %v143_v19 }
 0x117   :  { %136 = vst.msk [vmem:[#allocation8] sm:$0x1] %vm135_vm4, %v134_v25 }
 0x118   :  { %v146_v26 = vadd.f32 %v145_v24, %v137_v23 }
 0x11a   :  { %147 = vst.msk [vmem:[#allocation8 + $0x1] sm:$0x1] %vm135_vm4, %v146_v26 }
 0x11b   :  { %278 = shalt.err (!%p275_p0)
}
 0x11c   :  { %s279_s25 = scalar_lea.hbm %s387_s3, 32 }
 0x11d   :  { %p280_p1 = scmp.ne.s32.totalorder %s387_s3, %s279_s25  ;;  %p283_p2 = scmp.lt.u32.totalorder %s279_s25, %s387_s3 }
 0x11f   :  { %p285_p3 = pnand %p283_p2, %p280_p1 }
 0x121   :  { %288 = shalt.err (!%p285_p3)
}
 0x122   :  { %167 = dma.vmem_to_hbm [thread:$0]  %s165_s22, 32, %s387_s3, [#allocation9]  }
 0x123   :  { %293 = dma.done.wait [#allocation4], 128  }
 0x124   :  { %294 = vsyncadd [#allocation4], 4294967168 }
 0x125   :  { %295 = dma.done.wait [#allocation9], 32  }
 0x126   :  { %296 = vsyncadd [#allocation9], 4294967264 }
 0x127   :  { %174 = vsyncpa [#allocation3], 1 }
 0x128   :  { %175 = vsyncpa [#allocation6], 1 }
 0x129   :  { %176 = vsyncpa [#allocation4], 1 }
 0x12a   :  { %177 = vsyncpa [#allocation9], 1 }

</bundles_post_ra>
